<compile_context>
chip_gen: v6e
topology: v6e:2x2x1
jax: 0.10.0
libtpu: 0.0.40
codegen_flags: <defaults>
</compile_context>

<pallas_src>
import functools

import jax
import jax.numpy as jnp
from jax.experimental import pallas as pl
from jax.experimental.pallas import tpu as pltpu

_VMEM_LIMIT_BYTES = 32 * 1024 * 1024     # fits scoped VMEM on v5e/v6e/v7x
_FUSED_VMEM_BUDGET = 20 * 1024 * 1024    # working-set budget for the 1-pass path


# ----------------------- single-pass (fused) kernel --------------------------


def _aff_fused_kernel(x_ref, r_ref,
                      wl1_ref, bl1_ref, wl2_ref, bl2_ref,
                      wg1t_ref, bg1_row_ref, wg2_ref, bg2_ref,
                      o_ref, *, inv_hw):
    """One grid step = one image: GAP + global MLP + local branch + fuse.

    x/r blocks are (1, C, HW) with HW on lanes, so the 1x1 convs are W @ X
    matmuls (C contracted on sublanes, HW lane-dense -> unmasked stores).
    The global-branch MLP on the (C, 1) channel mean uses lane/sublane
    broadcasts + reductions only (no tiny-N matmuls, no in-kernel transposes).
    HBM traffic: read x, read r, write out — 3 passes total.
    """
    x = x_ref[0]                                                 # (C, HW)
    r = r_ref[0]                                                 # (C, HW)
    xa = x + r

    # ---- global branch: per-image channel mean -> 2-layer MLP ----
    mean = jnp.sum(xa, axis=1, keepdims=True) * inv_hw           # (C, 1)
    hg = jnp.sum(wg1t_ref[...] * mean, axis=0, keepdims=True)    # (1, Cr)
    hg = jnp.maximum(hg + bg1_row_ref[...], 0.0)                 # ReLU
    xg = jnp.sum(wg2_ref[...] * hg, axis=1, keepdims=True)       # (C, 1)
    xg = xg + bg2_ref[...]

    # ---- local branch: per-pixel 1x1 convs (BN folded) ----
    h = jnp.dot(wl1_ref[...], xa, preferred_element_type=jnp.float32)
    h = jnp.maximum(h + bl1_ref[...], 0.0)                       # (Cr, HW)
    xl = jnp.dot(wl2_ref[...], h, preferred_element_type=jnp.float32)
    xl = xl + bl2_ref[...]                                       # (C, HW)

    wei = jax.nn.sigmoid(xl + xg)                                # xg broadcasts
    # 2*x*wei + 2*r*(1-wei)  ==  2*(r + wei*(x - r))
    o_ref[0] = 2.0 * (r + wei * (x - r))


# ----------------------- two-pass fallback kernels ----------------------------


def _gap_kernel(x_ref, r_ref, g_ref, acc_ref, *, inv_hw):
    """Pass 1: per-image global average pool of (x + residual).

    Grid = (N, HW_tiles); the HW-tile axis is the reduction ("arbitrary").
    Tiles are (1, C, T) with T on lanes; lane reduction gives a (C, 1) partial
    sum accumulated in VMEM scratch.
    """
    t = pl.program_id(1)

    @pl.when(t == 0)
    def _():
        acc_ref[...] = jnp.zeros_like(acc_ref)

    xa = x_ref[0] + r_ref[0]                                     # (C, T)
    acc_ref[...] += jnp.sum(xa, axis=1, keepdims=True)           # (C, 1)

    @pl.when(t == pl.num_programs(1) - 1)
    def _():
        g_ref[0] = acc_ref[...] * inv_hw                         # (C, 1) mean


def _fuse_kernel(x_ref, r_ref, xg_ref, wl1_ref, bl1_ref, wl2_ref, bl2_ref,
                 o_ref):
    """Pass 2: local attention branch + sigmoid fuse on (C, T) tiles.

    Grid = (N, HW_tiles), both axes "parallel" (tiles are independent).
    """
    x = x_ref[0]                                                 # (C, T)
    r = r_ref[0]                                                 # (C, T)
    xa = x + r

    h = jnp.dot(wl1_ref[...], xa, preferred_element_type=jnp.float32)
    h = jnp.maximum(h + bl1_ref[...], 0.0)                       # (Cr, T)
    xl = jnp.dot(wl2_ref[...], h, preferred_element_type=jnp.float32)
    xl = xl + bl2_ref[...]                                       # (C, T)

    wei = jax.nn.sigmoid(xl + xg_ref[0])                         # xg (C,1) bcast
    o_ref[0] = 2.0 * (r + wei * (x - r))


# ------------------------------ wrappers -------------------------------------


def _pick_hw_tile(hw, c, budget_bytes=12 << 20, cap=2048):
    """Largest HW tile that (a) is a multiple of 128 dividing HW (or HW itself),
    (b) keeps double-buffered x/res/out tiles within `budget_bytes`, and
    (c) stays <= `cap` so the HW grid axis has many parallel steps."""
    limit = max(128, min(cap, (budget_bytes // (6 * 4 * c)) // 128 * 128))
    if hw <= limit:
        return hw
    for t in range(limit, 127, -128):
        if hw % t == 0:
            return t
    return hw  # fallback: whole spatial extent (odd HW sizes)


def _aff_fused(x, r, params, N, C, HW, Cr):
    """Single-pass path: one image per grid step, everything in VMEM."""
    data_spec = pl.BlockSpec((1, C, HW), lambda n: (n, 0, 0))
    const2d = lambda shape: pl.BlockSpec(shape, lambda n: (0, 0))

    # Pre-transpose the tiny global-branch weights so the in-kernel MLP needs
    # only lane/sublane broadcasts (no transposes, no tiny-N matmuls).
    wg1_t = params["wg1"].T                                      # (C, Cr)
    bg1_row = params["bg1"].T                                    # (1, Cr)

    return pl.pallas_call(
        functools.partial(_aff_fused_kernel, inv_hw=1.0 / float(HW)),
        out_shape=jax.ShapeDtypeStruct((N, C, HW), jnp.float32),
        grid_spec=pltpu.PrefetchScalarGridSpec(
            num_scalar_prefetch=0,
            grid=(N,),
            in_specs=[
                data_spec,                                       # x
                data_spec,                                       # residual
                const2d((Cr, C)), const2d((Cr, 1)),              # local conv1
                const2d((C, Cr)), const2d((C, 1)),               # local conv2
                const2d((C, Cr)), const2d((1, Cr)),              # global conv1ᵀ
                const2d((C, Cr)), const2d((C, 1)),               # global conv2
            ],
            out_specs=data_spec),
        compiler_params=pltpu.CompilerParams(
            dimension_semantics=("parallel",),
            vmem_limit_bytes=_VMEM_LIMIT_BYTES),
    )(x, r,
      params["wl1"], params["bl1"], params["wl2"], params["bl2"],
      wg1_t, bg1_row, params["wg2"], params["bg2"])


def _aff_two_pass(x, r, params, N, C, HW, Cr):
    """Fallback for large feature maps: tiled GAP pass + tiled fuse pass."""
    hw_tile = _pick_hw_tile(HW, C)
    n_tiles = HW // hw_tile

    data_spec = pl.BlockSpec((1, C, hw_tile), lambda n, t: (n, 0, t))
    col_spec = pl.BlockSpec((1, C, 1), lambda n, t: (n, 0, 0))
    full2d = lambda n, t: (0, 0)

    # ---- pass 1: tiled GAP of (x + residual) -> per-image mean (N, C, 1) ----
    g = pl.pallas_call(
        functools.partial(_gap_kernel, inv_hw=1.0 / float(HW)),
        out_shape=jax.ShapeDtypeStruct((N, C, 1), jnp.float32),
        grid_spec=pltpu.PrefetchScalarGridSpec(
            num_scalar_prefetch=0,
            grid=(N, n_tiles),
            in_specs=[data_spec, data_spec],
            out_specs=col_spec,
            scratch_shapes=[pltpu.VMEM((C, 1), jnp.float32)],
        ),
        compiler_params=pltpu.CompilerParams(
            dimension_semantics=("parallel", "arbitrary"),
            vmem_limit_bytes=_VMEM_LIMIT_BYTES),
    )(x, r)

    # ---- global-branch MLP on the tiny (N, C) mean (negligible, left to XLA)
    g2 = g[:, :, 0]                                              # (N, C)
    hg = jnp.maximum(g2 @ params["wg1"].T + params["bg1"][:, 0], 0.0)
    xg = (hg @ params["wg2"].T + params["bg2"][:, 0])[:, :, None]  # (N, C, 1)

    # ---- pass 2: local branch + fuse, tiled over (N, HW) ----
    return pl.pallas_call(
        _fuse_kernel,
        out_shape=jax.ShapeDtypeStruct((N, C, HW), jnp.float32),
        grid_spec=pltpu.PrefetchScalarGridSpec(
            num_scalar_prefetch=0,
            grid=(N, n_tiles),
            in_specs=[
                data_spec,                                       # x
                data_spec,                                       # residual
                col_spec,                                        # xg (per image)
                pl.BlockSpec((Cr, C), full2d),                   # local conv1
                pl.BlockSpec((Cr, 1), full2d),
                pl.BlockSpec((C, Cr), full2d),                   # local conv2
                pl.BlockSpec((C, 1), full2d),
            ],
            out_specs=data_spec),
        compiler_params=pltpu.CompilerParams(
            dimension_semantics=("parallel", "parallel"),
            vmem_limit_bytes=_VMEM_LIMIT_BYTES),
    )(x, r, xg,
      params["wl1"], params["bl1"], params["wl2"], params["bl2"])


def aff_forward(x_nchw, res_nchw, params, *, force_two_pass=False):
    """x_nchw, res_nchw: (N, C, H, W) float32. params: dict of BN-folded
    weights in W@X layout: w* are (c_out, c_in), b* are (c_out, 1)."""
    N, C, H, W = x_nchw.shape
    HW = H * W
    Cr = params["wl1"].shape[0]

    # NCHW -> (N, C, HW): free reshape, no transpose. HW lands on lanes.
    x = x_nchw.reshape(N, C, HW)
    r = res_nchw.reshape(N, C, HW)

    # Rough fused-path working set: 2x-buffered x/r/out tiles (6 slabs) plus
    # in-kernel temporaries (xa, h, xl/wei) ~ 4 more slabs of C*HW*4 bytes.
    fused_fits = (10 * C * HW * 4) <= _FUSED_VMEM_BUDGET

    if fused_fits and not force_two_pass:
        out = _aff_fused(x, r, params, N, C, HW, Cr)
    else:
        out = _aff_two_pass(x, r, params, N, C, HW, Cr)

    # (N, C, HW) -> NCHW is again a free reshape.
    return out.reshape(N, C, H, W)


# ------------------------- params & reference --------------------------------


def _fold_conv_bn(key, c_in, c_out, eps=1e-5):
    """Deterministic conv1x1 + eval-mode BatchNorm, folded into a single
    (c_out, c_in) weight (W @ x layout) and a (c_out, 1) bias column."""
    k_w, k_b, k_g, k_be, k_m, k_v = jax.random.split(key, 6)
    w = jax.random.normal(k_w, (c_out, c_in), jnp.float32) * 0.05
    b = jax.random.normal(k_b, (c_out,), jnp.float32) * 0.05
    gamma = 1.0 + 0.1 * jax.random.normal(k_g, (c_out,), jnp.float32)
    beta = 0.1 * jax.random.normal(k_be, (c_out,), jnp.float32)
    mean = 0.1 * jax.random.normal(k_m, (c_out,), jnp.float32)
    var = 1.0 + 0.1 * jax.random.uniform(k_v, (c_out,), jnp.float32)
    scale = gamma / jnp.sqrt(var + eps)
    w_eff = w * scale[:, None]                          # (c_out, c_in)
    b_eff = ((b - mean) * scale + beta)[:, None]        # (c_out, 1)
    return w_eff, b_eff


def make_aff_params(channels=64, r=4, seed=0):
    inter = channels // r
    keys = jax.random.split(jax.random.PRNGKey(seed), 4)
    wl1, bl1 = _fold_conv_bn(keys[0], channels, inter)
    wl2, bl2 = _fold_conv_bn(keys[1], inter, channels)
    wg1, bg1 = _fold_conv_bn(keys[2], channels, inter)
    wg2, bg2 = _fold_conv_bn(keys[3], inter, channels)
    return dict(wl1=wl1, bl1=bl1, wl2=wl2, bl2=bl2,
                wg1=wg1, bg1=bg1, wg2=wg2, bg2=bg2)


def aff_reference(x, res, p):
    """Pure-JAX reference (same folded params) for sanity checking."""
    N, C, H, W = x.shape
    xa = (x + res).reshape(N, C, H * W)
    h_l = jnp.maximum(jnp.einsum('ic,nch->nih', p["wl1"], xa) + p["bl1"][None],
                      0.0)
    xl = jnp.einsum('ci,nih->nch', p["wl2"], h_l) + p["bl2"][None]
    g = jnp.mean(xa, axis=2, keepdims=True)                       # (N, C, 1)
    h_g = jnp.maximum(jnp.einsum('ic,ncj->nij', p["wg1"], g) + p["bg1"][None],
                      0.0)
    xg = jnp.einsum('ci,nij->ncj', p["wg2"], h_g) + p["bg2"][None]
    wei = jax.nn.sigmoid(xl + xg).reshape(N, C, H, W)
    return 2.0 * x * wei + 2.0 * res * (1.0 - wei)


if __name__ == "__main__":
    N, C, H, W = 2, 64, 16, 16          # AFF defaults: channels=64, r=4
    key = jax.random.PRNGKey(0)
    kx, kr = jax.random.split(key)
    x = jax.random.normal(kx, (N, C, H, W), jnp.float32)
    residual = jax.random.normal(kr, (N, C, H, W), jnp.float32)

    params = make_aff_params(channels=C, r=4, seed=0)
    ref = aff_reference(x, residual, params)

    # Default path (single-pass fused kernel at this size).
    out = jax.block_until_ready(aff_forward(x, residual, params))
    assert out.shape == (N, C, H, W)
    assert jnp.allclose(out, ref, atol=2e-4, rtol=2e-4), \
        float(jnp.max(jnp.abs(out - ref)))

    # Fallback path (tiled GAP + fuse), exercised for coverage.
    out2 = jax.block_until_ready(
        aff_forward(x, residual, params, force_two_pass=True))
    assert jnp.allclose(out2, ref, atol=2e-4, rtol=2e-4), \
        float(jnp.max(jnp.abs(out2 - ref)))

    print("KERNEL_OK")
</pallas_src>

<mosaic_0001>
module attributes {stable_mosaic.version = 11 : i64} {
  func.func @_aff_fused_kernel(%arg0: i32, %arg1: memref<1x64x256xf32, #tpu.memory_space<vmem>>, %arg2: memref<1x64x256xf32, #tpu.memory_space<vmem>>, %arg3: memref<16x64xf32, #tpu.memory_space<vmem>>, %arg4: memref<16x1xf32, #tpu.memory_space<vmem>>, %arg5: memref<64x16xf32, #tpu.memory_space<vmem>>, %arg6: memref<64x1xf32, #tpu.memory_space<vmem>>, %arg7: memref<64x16xf32, #tpu.memory_space<vmem>>, %arg8: memref<1x16xf32, #tpu.memory_space<vmem>>, %arg9: memref<64x16xf32, #tpu.memory_space<vmem>>, %arg10: memref<64x1xf32, #tpu.memory_space<vmem>>, %arg11: memref<1x64x256xf32, #tpu.memory_space<vmem>>) attributes {dimension_semantics = [#tpu.dimension_semantics<parallel>], iteration_bounds = array<i64: 2>, scalar_prefetch = 0 : i64, scratch_operands = 0 : i64, tpu.core_type = #tpu.core_type<tc>, window_params = [{transform_indices = @transform_0, window_bounds = array<i64: 1, 64, 256>}, {transform_indices = @transform_1, window_bounds = array<i64: 1, 64, 256>}, {pipeline_mode = #tpu.pipeline_mode<synchronous>, transform_indices = @transform_2, window_bounds = array<i64: 16, 64>}, {pipeline_mode = #tpu.pipeline_mode<synchronous>, transform_indices = @transform_3, window_bounds = array<i64: 16, 1>}, {pipeline_mode = #tpu.pipeline_mode<synchronous>, transform_indices = @transform_4, window_bounds = array<i64: 64, 16>}, {pipeline_mode = #tpu.pipeline_mode<synchronous>, transform_indices = @transform_5, window_bounds = array<i64: 64, 1>}, {pipeline_mode = #tpu.pipeline_mode<synchronous>, transform_indices = @transform_6, window_bounds = array<i64: 64, 16>}, {pipeline_mode = #tpu.pipeline_mode<synchronous>, transform_indices = @transform_7, window_bounds = array<i64: 1, 16>}, {pipeline_mode = #tpu.pipeline_mode<synchronous>, transform_indices = @transform_8, window_bounds = array<i64: 64, 16>}, {pipeline_mode = #tpu.pipeline_mode<synchronous>, transform_indices = @transform_9, window_bounds = array<i64: 64, 1>}, {transform_indices = @transform_10, window_bounds = array<i64: 1, 64, 256>}]} {
    %c0 = arith.constant 0 : index
    %c0_0 = arith.constant 0 : index
    %c0_1 = arith.constant 0 : index
    %0 = vector.load %arg1[%c0, %c0_0, %c0_1] : memref<1x64x256xf32, #tpu.memory_space<vmem>>, vector<1x64x256xf32>
    %1 = vector.shape_cast %0 : vector<1x64x256xf32> to vector<64x256xf32>
    %c0_2 = arith.constant 0 : index
    %c0_3 = arith.constant 0 : index
    %c0_4 = arith.constant 0 : index
    %2 = vector.load %arg2[%c0_2, %c0_3, %c0_4] : memref<1x64x256xf32, #tpu.memory_space<vmem>>, vector<1x64x256xf32>
    %3 = vector.shape_cast %2 : vector<1x64x256xf32> to vector<64x256xf32>
    %4 = arith.addf %1, %3 : vector<64x256xf32>
    %cst = arith.constant dense<0.000000e+00> : vector<64xf32>
    %5 = vector.multi_reduction <add>, %4, %cst [1] : vector<64x256xf32> to vector<64xf32>
    %6 = vector.shape_cast %5 : vector<64xf32> to vector<64x1xf32>
    %cst_5 = arith.constant 3.906250e-03 : f32
    %7 = vector.broadcast %cst_5 : f32 to vector<64x1xf32>
    %8 = arith.mulf %6, %7 : vector<64x1xf32>
    %c0_6 = arith.constant 0 : index
    %c0_7 = arith.constant 0 : index
    %9 = vector.load %arg7[%c0_6, %c0_7] : memref<64x16xf32, #tpu.memory_space<vmem>>, vector<64x16xf32>
    %10 = vector.broadcast %8 : vector<64x1xf32> to vector<64x16xf32>
    %11 = arith.mulf %9, %10 : vector<64x16xf32>
    %cst_8 = arith.constant dense<0.000000e+00> : vector<16xf32>
    %12 = vector.multi_reduction <add>, %11, %cst_8 [0] : vector<64x16xf32> to vector<16xf32>
    %13 = vector.shape_cast %12 : vector<16xf32> to vector<1x16xf32>
    %c0_9 = arith.constant 0 : index
    %c0_10 = arith.constant 0 : index
    %14 = vector.load %arg8[%c0_9, %c0_10] : memref<1x16xf32, #tpu.memory_space<vmem>>, vector<1x16xf32>
    %15 = arith.addf %13, %14 : vector<1x16xf32>
    %cst_11 = arith.constant 0.000000e+00 : f32
    %16 = vector.broadcast %cst_11 : f32 to vector<1x16xf32>
    %17 = arith.maximumf %15, %16 : vector<1x16xf32>
    %c0_12 = arith.constant 0 : index
    %c0_13 = arith.constant 0 : index
    %18 = vector.load %arg9[%c0_12, %c0_13] : memref<64x16xf32, #tpu.memory_space<vmem>>, vector<64x16xf32>
    %19 = vector.broadcast %17 : vector<1x16xf32> to vector<64x16xf32>
    %20 = arith.mulf %18, %19 : vector<64x16xf32>
    %cst_14 = arith.constant dense<0.000000e+00> : vector<64xf32>
    %21 = vector.multi_reduction <add>, %20, %cst_14 [1] : vector<64x16xf32> to vector<64xf32>
    %22 = vector.shape_cast %21 : vector<64xf32> to vector<64x1xf32>
    %c0_15 = arith.constant 0 : index
    %c0_16 = arith.constant 0 : index
    %23 = vector.load %arg10[%c0_15, %c0_16] : memref<64x1xf32, #tpu.memory_space<vmem>>, vector<64x1xf32>
    %24 = arith.addf %22, %23 : vector<64x1xf32>
    %c0_17 = arith.constant 0 : index
    %c0_18 = arith.constant 0 : index
    %25 = vector.load %arg3[%c0_17, %c0_18] : memref<16x64xf32, #tpu.memory_space<vmem>>, vector<16x64xf32>
    %cst_19 = arith.constant dense<0.000000e+00> : vector<16x256xf32>
    %26 = tpu.matmul %25, %4, %cst_19 {dimension_numbers = #tpu.dot_dimension_numbers<[1], [0], [0], [1], [0, 0, 1, 1], [], []>} : vector<16x64xf32>, vector<64x256xf32>, vector<16x256xf32> -> vector<16x256xf32>
    %c0_20 = arith.constant 0 : index
    %c0_21 = arith.constant 0 : index
    %27 = vector.load %arg4[%c0_20, %c0_21] : memref<16x1xf32, #tpu.memory_space<vmem>>, vector<16x1xf32>
    %28 = vector.broadcast %27 : vector<16x1xf32> to vector<16x256xf32>
    %29 = arith.addf %26, %28 : vector<16x256xf32>
    %cst_22 = arith.constant 0.000000e+00 : f32
    %30 = vector.broadcast %cst_22 : f32 to vector<16x256xf32>
    %31 = arith.maximumf %29, %30 : vector<16x256xf32>
    %c0_23 = arith.constant 0 : index
    %c0_24 = arith.constant 0 : index
    %32 = vector.load %arg5[%c0_23, %c0_24] : memref<64x16xf32, #tpu.memory_space<vmem>>, vector<64x16xf32>
    %cst_25 = arith.constant dense<0.000000e+00> : vector<64x256xf32>
    %33 = tpu.matmul %32, %31, %cst_25 {dimension_numbers = #tpu.dot_dimension_numbers<[1], [0], [0], [1], [0, 0, 1, 1], [], []>} : vector<64x16xf32>, vector<16x256xf32>, vector<64x256xf32> -> vector<64x256xf32>
    %c0_26 = arith.constant 0 : index
    %c0_27 = arith.constant 0 : index
    %34 = vector.load %arg6[%c0_26, %c0_27] : memref<64x1xf32, #tpu.memory_space<vmem>>, vector<64x1xf32>
    %35 = vector.broadcast %34 : vector<64x1xf32> to vector<64x256xf32>
    %36 = arith.addf %33, %35 : vector<64x256xf32>
    %37 = vector.broadcast %24 : vector<64x1xf32> to vector<64x256xf32>
    %38 = arith.addf %36, %37 : vector<64x256xf32>
    %39 = arith.negf %38 : vector<64x256xf32>
    %40 = math.exp %39 : vector<64x256xf32>
    %cst_28 = arith.constant 1.000000e+00 : f32
    %41 = vector.broadcast %cst_28 : f32 to vector<64x256xf32>
    %42 = arith.addf %41, %40 : vector<64x256xf32>
    %43 = arith.divf %41, %42 : vector<64x256xf32>
    %44 = arith.subf %1, %3 : vector<64x256xf32>
    %45 = arith.mulf %43, %44 : vector<64x256xf32>
    %46 = arith.addf %3, %45 : vector<64x256xf32>
    %cst_29 = arith.constant 2.000000e+00 : f32
    %47 = vector.broadcast %cst_29 : f32 to vector<64x256xf32>
    %48 = arith.mulf %47, %46 : vector<64x256xf32>
    %c0_30 = arith.constant 0 : index
    %c0_31 = arith.constant 0 : index
    %c0_32 = arith.constant 0 : index
    %49 = vector.load %arg11[%c0_30, %c0_31, %c0_32] : memref<1x64x256xf32, #tpu.memory_space<vmem>>, vector<1x64x256xf32>
    %50 = vector.shape_cast %49 : vector<1x64x256xf32> to vector<64x256xf32>
    %51 = vector.shape_cast %48 : vector<64x256xf32> to vector<1x64x256xf32>
    tpu.vector_store %arg11[%c0_30, %c0_31, %c0_32], %51 {strides = array<i32>} : memref<1x64x256xf32, #tpu.memory_space<vmem>>, vector<1x64x256xf32>,
    return
  }
  func.func @transform_0(%arg0: i32) -> (i32, i32, i32) {
    %c0_i32 = arith.constant 0 : i32
    %c0_i32_0 = arith.constant 0 : i32
    %c0_i32_1 = arith.constant 0 : i32
    return %arg0, %c0_i32, %c0_i32_0 : i32, i32, i32
  }
  func.func @transform_1(%arg0: i32) -> (i32, i32, i32) {
    %c0_i32 = arith.constant 0 : i32
    %c0_i32_0 = arith.constant 0 : i32
    %c0_i32_1 = arith.constant 0 : i32
    return %arg0, %c0_i32, %c0_i32_0 : i32, i32, i32
  }
  func.func @transform_2(%arg0: i32) -> (i32, i32) {
    %c0_i32 = arith.constant 0 : i32
    %c0_i32_0 = arith.constant 0 : i32
    %c0_i32_1 = arith.constant 0 : i32
    return %c0_i32, %c0_i32_0 : i32, i32
  }
  func.func @transform_3(%arg0: i32) -> (i32, i32) {
    %c0_i32 = arith.constant 0 : i32
    %c0_i32_0 = arith.constant 0 : i32
    %c0_i32_1 = arith.constant 0 : i32
    return %c0_i32, %c0_i32_0 : i32, i32
  }
  func.func @transform_4(%arg0: i32) -> (i32, i32) {
    %c0_i32 = arith.constant 0 : i32
    %c0_i32_0 = arith.constant 0 : i32
    %c0_i32_1 = arith.constant 0 : i32
    return %c0_i32, %c0_i32_0 : i32, i32
  }
  func.func @transform_5(%arg0: i32) -> (i32, i32) {
    %c0_i32 = arith.constant 0 : i32
    %c0_i32_0 = arith.constant 0 : i32
    %c0_i32_1 = arith.constant 0 : i32
    return %c0_i32, %c0_i32_0 : i32, i32
  }
  func.func @transform_6(%arg0: i32) -> (i32, i32) {
    %c0_i32 = arith.constant 0 : i32
    %c0_i32_0 = arith.constant 0 : i32
    %c0_i32_1 = arith.constant 0 : i32
    return %c0_i32, %c0_i32_0 : i32, i32
  }
  func.func @transform_7(%arg0: i32) -> (i32, i32) {
    %c0_i32 = arith.constant 0 : i32
    %c0_i32_0 = arith.constant 0 : i32
    %c0_i32_1 = arith.constant 0 : i32
    return %c0_i32, %c0_i32_0 : i32, i32
  }
  func.func @transform_8(%arg0: i32) -> (i32, i32) {
    %c0_i32 = arith.constant 0 : i32
    %c0_i32_0 = arith.constant 0 : i32
    %c0_i32_1 = arith.constant 0 : i32
    return %c0_i32, %c0_i32_0 : i32, i32
  }
  func.func @transform_9(%arg0: i32) -> (i32, i32) {
    %c0_i32 = arith.constant 0 : i32
    %c0_i32_0 = arith.constant 0 : i32
    %c0_i32_1 = arith.constant 0 : i32
    return %c0_i32, %c0_i32_0 : i32, i32
  }
  func.func @transform_10(%arg0: i32) -> (i32, i32, i32) {
    %c0_i32 = arith.constant 0 : i32
    %c0_i32_0 = arith.constant 0 : i32
    %c0_i32_1 = arith.constant 0 : i32
    return %arg0, %c0_i32, %c0_i32_0 : i32, i32, i32
  }
}

</mosaic_0001>

<bundles_post_ra>
// kernel: tpu_custom_call.1
= control target key start
LH: loop header
LB: loop body
LE: loop exit
PB: predicated region body
PF: predicated region fallthrough
CT: control target
= control target key end

     0   :  { %15 = vsyncpa [#allocation3], 0  ;;  %s2089_s0 = inlined_call_operand.vmem [shape: f32[2,64,256], index: 0, kind: input, shape index: {}]   ;;  %s2090_s1 = inlined_call_operand.hbm [shape: f32[2,64,256], index: 1, kind: input, shape index: {}]   ;;  %s2091_s2 = inlined_call_operand.vmem [shape: f32[16,64], index: 2, kind: input, shape index: {}]   ;;  %s2092_s3 = inlined_call_operand.vmem [shape: f32[16,1], index: 3, kind: input, shape index: {}]   ;;  %s2093_s4 = inlined_call_operand.vmem [shape: f32[64,16], index: 4, kind: input, shape index: {}]   ;;  %s2094_s5 = inlined_call_operand.vmem [shape: f32[64,1], index: 5, kind: input, shape index: {}]   ;;  %s2095_s6 = inlined_call_operand.vmem [shape: f32[64,16], index: 6, kind: input, shape index: {}]   ;;  %s2096_s7 = inlined_call_operand.vmem [shape: f32[1,16], index: 7, kind: input, shape index: {}]   ;;  %s2097_s8 = inlined_call_operand.vmem [shape: f32[64,16], index: 8, kind: input, shape index: {}]   ;;  %s2098_s9 = inlined_call_operand.vmem [shape: f32[64,1], index: 9, kind: input, shape index: {}]   ;;  %s2099_s10 = inlined_call_operand.hbm [shape: f32[2,64,256], index: 10, kind: output, shape index: {}]  }
   0x1   :  { %17 = vsyncpa [#allocation3 + $0x1], 0 }
   0x2   :  { %18 = vsyncpa [#allocation4], 0 }
   0x3   :  { %20 = vsyncpa [#allocation4 + $0x1], 0  ;;  %s1530_s13 = smov 0   ;;  %s1532_s14 = smov 0  }
   0x4   :  { %s1534_s15 = smov 0   ;;  %s1536_s16 = smov 0  }
   0x5 LB: > { %2113 = sst [smem:[#allocation8_spill]] %s1461_s15  ;;  %s1551_s17 = sadd.s32 4294967295, %s1465_s16   ;;  %s1465_s16 = sphi %s1536_s16, %s2137_s16   ;;  %s1461_s15 = sphi %s1534_s15, %s2139_s15   ;;  %s1457_s14 = sphi %s1532_s14, %s2141_s14   ;;  %s1453_s13 = sphi %s1530_s13, %s2140_s13  }
   0x6   : > { %s1205_s18 = sadd.s32 4294967294, %s1465_s16   ;;  %s1555_s19 = sadd.s32 1, %s1465_s16  }
   0x7   : > { %2114 = sst [smem:[#allocation9_spill]] %s1555_s19  ;;  %s59_s20 = sadd.s32 1, %s1461_s15 }
   0x8   : > { %s56_s21 = ssub.s32 %s1465_s16, %s1555_s19  ;;  %p66_p0 = scmp.ne.s32.totalorder %s1461_s15, %s1457_s14 }
   0x9   : > { %p57_p1 = scmp.eq.s32.totalorder %s56_s21, 0  ;;  %p67_p2 = scmp.eq.s32.totalorder %s1465_s16, 0 }
   0xa   : > { %p72_p3 = scmp.ne.s32.totalorder %s1457_s14, %s1453_s13  ;;  %p73_p4 = scmp.eq.s32.totalorder %s1551_s17, 0 }
   0xb   : > { %s1567_s22 = scalar_select %p57_p1, %s1461_s15, %s59_s20  }
   0xc   : > { %p1569_p5 = por %p67_p2, %p66_p0  ;;  %p1573_p6 = por %p73_p4, %p72_p3 }
   0xd   : > { %2115 = sst [smem:[#allocation10_spill]] %s1567_s22  ;;  %p264_p7 = scmp.eq.s32.totalorder %s1551_s17, 1 }
   0xe   : > { %s2117_s24 = scalar_select %p1573_p6, 1, 0 }
   0xf   : > { %p270_p8 = scmp.eq.s32.totalorder %s1205_s18, 1  ;;  %p1266_p10 = scmp.lt.s32.totalorder %s1465_s16, 2 }
  0x10   : > { %p1580_p11 = por %p264_p7, %p66_p0  ;;  %s322_s27 = sand.u32 1, %s1461_s15  }
  0x11   : > { %p1584_p12 = por %p270_p8, %p72_p3  ;;  %s1247_s28 = sshll.u32 %s1465_s16, 11 }
  0x12   : > { %s2118_s25 = scalar_select %p1580_p11, 1, 0 }
  0x13   : > { %s2119_s26 = scalar_select %p1584_p12, 1, 0 }
  0x14   : > { %s1208_s29 = sshll.u32 %s322_s27, 7  ;;  %s1593_s12 = scalar_lea.hbm %s2090_s1, %s1247_s28 }
  0x15   : > { %s326_s18 = scalar_lea.vmem [#allocation2], %s1208_s29  ;;  %p1597_p13 = pnand %p1266_p10, %p1569_p5 }
  0x16   : > { %s333_s20 = sshll.u32 %s326_s18, 4  ;;  %s1603_s22 = scalar_lea.sflag [#allocation3], %s322_s27  ;;  %s1601_s20 = int_to_ptr.vmem [resolvable:$true] %s333_s20 }
  0x17   : > { %s1373_s15 = scalar_lea.hbm %s1593_s12, 2048  ;;  %p1375_p1 = pneg %p1597_p13 }
  0x18   : > { %p1374_p0 = scmp.ne.s32.totalorder %s1593_s12, %s1373_s15  ;;  %s1378_s29 = scalar_lea.hbm %s2090_s1, 4096 }
  0x19   : > { %p1379_p4 = scmp.lt.s32.totalorder %s1593_s12, %s2090_s1  ;;  %p1380_p5 = scmp.lt.s32.totalorder %s1378_s29, %s1373_s15 }
  0x1a   : > { %p1376_p2 = pnand %p1375_p1, %p1374_p0 }
  0x1b   : > { %p1381_p7 = por %p1380_p5, %p1379_p4 }
  0x1c   : > { %p1377_p3 = pneg %p1376_p2 }
  0x1e   : > { %p1382_p8 = pnand %p1381_p7, %p1377_p3 }
  0x20   : > { %1385 = shalt.err (!%p1382_p8)
}
  0x21   : > { %s1386_s27 = scalar_lea.vmem %s1601_s20, 2048  ;;  %s1467_s18 = smov [#allocation2]  }
  0x22   : > { %p1387_p10 = scmp.ne.s32.totalorder %s1601_s20, %s1386_s27  ;;  %s1391_s19 = sshll.u32 %s1467_s18, 4  ;;  %s1392_s19 = int_to_ptr.vmem [resolvable:$false] %s1391_s19 }
  0x23   : > { %s1393_s28 = scalar_lea.vmem %s1392_s19, 4096  ;;  %p1394_p2 = scmp.lt.s32.totalorder %s1601_s20, %s1392_s19 }
  0x24   : > { %p1389_p9 = pnand %p1387_p10, %p1375_p1  ;;  %p1395_p12 = scmp.lt.s32.totalorder %s1393_s28, %s1386_s27 }
  0x26   : > { %p1390_p0 = pneg %p1389_p9  ;;  %p1396_p11 = por %p1395_p12, %p1394_p2 }
  0x28   : > { %p1397_p6 = pnand %p1396_p11, %p1390_p0 }
  0x2a   : > { %1400 = shalt.err (!%p1397_p6)
}
  0x2b   : > { %s1468_s15 = smov 256   ;;  %s1469_s30 = smov 16  }
  0x2c   : > { %1261 = dma.hbm_to_vmem [thread:$0]  (!%p1597_p13), %s1593_s12, 2048, %s1601_s20, %s1603_s22, %s1468_s15, %s1468_s15, %s1469_s30  }
  0x2d   : > { %p1211_p9 = scmp.ge.s32.totalorder %s1465_s16, 1  ;;  %p341_p1 = scmp.lt.s32.totalorder %s1465_s16, 3 }
  0x2f   : > { %p342_p3 = pnand %p1211_p9, %p341_p1 }
  0x31   : > { %345 = sbr.rel (%p342_p3) target bundleno = 614 (0x266), region = 60 }
  0x36   : > { %s1627_s19 = sand.u32 1, %s1457_s14   ;;  %p2121_p6 = scmp.ne.s32.totalorder %s2117_s24, 0 }
  0x37   : > { %s1212_s29 = sshll.u32 %s1627_s19, 7  ;;  %s348_s23 = scalar_lea.sflag [#allocation3], %s1627_s19 }
  0x38   : > { %s1633_s11 = scalar_lea.vmem [#allocation2], %s1212_s29 }
  0x39   : > { %1444 = dma.done.wait (%p2121_p6), %s348_s23, 2048  }
  0x3a   : > { %1446 = vsyncadd (%p2121_p6), %s348_s23, 4294965248  ;;  %p393_p11 = scmp.lt.s32.totalorder %s1551_s17, 1  ;;  %v1470_v0 = vmov 0   ;;  %v1471_v1 = vmov 0.0   ;;  %v582_v2 = vld [vmem:[%s2092_s3 + $0x8] sm:$0xff]  ;;  %v1655_v4 = vld [vmem:[%s1633_s11 + $0x78] sm:$0xff] }
  0x3b   : > { %1306 = vset.pattern.permute.xlu0 %v1470_v0  ;;  %664 = vmatprep.mubr.f32.mxu0 %v1471_v1  ;;  %2123 = vst [vmem:[#allocation12_spill] sm:$0xff] %v1655_v4  ;;  %v1665_v7 = vld [vmem:[%s1633_s11 + $0x70] sm:$0xff]  ;;  %v581_v8 = vld [vmem:[%s2092_s3] sm:$0xff]  ;;  %v1678_v11 = vld [vmem:[%s1633_s11 + $0x68] sm:$0xff]  ;;  %vm593_vm0 = vcmask 523264   ;;  %vm494_vm1 = vcmask 130048  }
  0x3c   : > { %s394_s22 = scalar_select %p393_p11, %s1551_s17, 1  ;;  %831 = vmatprep.mubr.f32.mxu1 %v1471_v1  ;;  %1307 = vset.pattern.permute.xlu1 %v1470_v0  ;;  %2125 = vst [vmem:[#allocation14_spill] sm:$0xff] %v1665_v7  ;;  %2127 = vst [vmem:[#allocation16_spill] sm:$0xff] %v1678_v11  ;;  %v1689_v14 = vld [vmem:[%s1633_s11 + $0x60] sm:$0xff]  ;;  %v1695_v16 = vld [vmem:[%s1633_s11 + $0x58] sm:$0xff] }
  0x3d   : > { %590 = vperm.xlu0 %1306, %v582_v2   ;;  %v1710_v20 = vld [vmem:[%s1633_s11 + $0x50] sm:$0xff]  ;;  %v1719_v23 = vld [vmem:[%s1633_s11 + $0x48] sm:$0xff]  ;;  %v1725_v25 = vld [vmem:[%s1633_s11 + $0x40] sm:$0xff]  ;;  %s1989_s28 = scalar_lea.vmem [#allocation5], %s1212_s29  ;;  %s1249_s29 = sshll.u32 %s1551_s17, 11 }
  0x3e   : > { %s1248_s12 = sshll.u32 %s394_s22, 7  ;;  %v1736_v29 = vld [vmem:[%s1633_s11 + $0x38] sm:$0xff]  ;;  %v1745_v32 = vld [vmem:[%s1633_s11 + $0x30] sm:$0xff]  ;;  %v1751_v34 = vld [vmem:[%s1633_s11 + $0x28] sm:$0xff]  ;;  %s1120_s15 = sshll.u32 %s1989_s28, 4  ;;  %s2044_s15 = int_to_ptr.vmem [resolvable:$true] %s1120_s15 }
  0x3f   : > { %s1646_s24 = scalar_lea.vmem %s2089_s0, %s1248_s12  ;;  %v1759_v37 = vld [vmem:[%s1633_s11 + $0x20] sm:$0xff]  ;;  %v1767_v40 = vld [vmem:[%s1633_s11 + $0x18] sm:$0xff]  ;;  %v1773_v42 = vld [vmem:[%s1633_s11 + $0x10] sm:$0xff]  ;;  %s2042_s22 = scalar_lea.hbm %s2099_s10, %s1249_s29 }
  0x40   : > { %v1652_v3 = vld [vmem:[%s1646_s24 + $0x78] sm:$0xff]  ;;  %v1662_v6 = vld [vmem:[%s1646_s24 + $0x70] sm:$0xff]  ;;  %v1675_v10 = vld [vmem:[%s1646_s24 + $0x68] sm:$0xff]  ;;  %s1107_s17 = scalar_lea.sflag [#allocation4], %s1627_s19  ;;  %s1401_s12 = scalar_lea.vmem %s2044_s15, 2048 }
  0x41   : > { %2122 = vst [vmem:[#allocation11_spill] sm:$0xff] %v1652_v3  ;;  %v1659_v5 = vadd.f32 %v1655_v4, %v1652_v3  ;;  %2124 = vst [vmem:[#allocation13_spill] sm:$0xff] %v1662_v6  ;;  %v1672_v9 = vadd.f32 %v1665_v7, %v1662_v6  ;;  %v1681_v12 = vld [vmem:[%s1646_s24 + $0x60] sm:$0xff]  ;;  %v1686_v13 = vadd.f32 %v1678_v11, %v1675_v10  ;;  %v1692_v15 = vld [vmem:[%s1646_s24 + $0x58] sm:$0xff]  ;;  %585 = vperm.xlu0 %1306, %v581_v8   ;;  %p1402_p12 = scmp.ne.s32.totalorder %s2044_s15, %s1401_s12  ;;  %p2134_p13 = scmp.ne.s32.totalorder %s2118_s25, 0 }
  0x42   : > { %2126 = vst [vmem:[#allocation15_spill] sm:$0xff] %v1675_v10  ;;  %v1700_v17 = vadd.f32 %v1689_v14, %v1681_v12  ;;  %v1704_v18 = vadd.f32 %v1695_v16, %v1692_v15  ;;  %v1707_v19 = vld [vmem:[%s1646_s24 + $0x50] sm:$0xff]  ;;  %v1713_v21 = vld [vmem:[%s1646_s24 + $0x48] sm:$0xff]  ;;  %v1722_v24 = vld [vmem:[%s1646_s24 + $0x40] sm:$0xff] }
  0x43   : > { %616 = vmatprep.subr.mxu0 %v1659_v5  ;;  %v440_v22 = vadd.f32 %v1710_v20, %v1707_v19  ;;  %v439_v26 = vadd.f32 %v1719_v23, %v1713_v21  ;;  %v438_v27 = vadd.f32 %v1725_v25, %v1722_v24  ;;  %v1733_v28 = vld [vmem:[%s1646_s24 + $0x38] sm:$0xff]  ;;  %v1739_v30 = vld [vmem:[%s1646_s24 + $0x30] sm:$0xff]  ;;  %v1748_v33 = vld [vmem:[%s1646_s24 + $0x28] sm:$0xff]  ;;  %v467_v61 = vadd.f32 %v1659_v5, %v1672_v9  ;;  %p1403_p4 = pnand %p1402_p12, %p2134_p13 }
  0x44   : > { %617 = vmatpush1.msra.mxu0 %v1672_v9  ;;  %v437_v31 = vadd.f32 %v1736_v29, %v1733_v28  ;;  %v436_v35 = vadd.f32 %v1745_v32, %v1739_v30  ;;  %v1756_v36 = vld [vmem:[%s1646_s24 + $0x20] sm:$0xff]  ;;  %v1762_v38 = vld [vmem:[%s1646_s24 + $0x18] sm:$0xff]  ;;  %v435_v39 = vadd.f32 %v1751_v34, %v1748_v33  ;;  %v1770_v41 = vld [vmem:[%s1646_s24 + $0x10] sm:$0xff]  ;;  %v464_v60 = vadd.f32 %v1686_v13, %v1700_v17 }
  0x45   : > { %618 = vmatprep.subr.mxu0 %v1686_v13  ;;  %v434_v43 = vadd.f32 %v1759_v37, %v1756_v36  ;;  %v1778_v44 = vld [vmem:[%s1646_s24 + $0x8] sm:$0xff]  ;;  %v1784_v46 = vld [vmem:[%s1646_s24] sm:$0xff]  ;;  %v433_v47 = vadd.f32 %v1767_v40, %v1762_v38  ;;  %v432_v50 = vadd.f32 %v1773_v42, %v1770_v41  ;;  %v458_v57 = vadd.f32 %v439_v26, %v438_v27  ;;  %p1404_p5 = pneg %p1403_p4 }
  0x46   : > { %619 = vmatpush1.msra.mxu0 %v1700_v17  ;;  %v1781_v45 = vld [vmem:[%s1633_s11 + $0x8] sm:$0xff]  ;;  %v1791_v49 = vld [vmem:[%s1633_s11] sm:$0xff]  ;;  %v455_v56 = vadd.f32 %v437_v31, %v436_v35  ;;  %v461_v58 = vadd.f32 %v1704_v18, %v440_v22 }
  0x47   : > { %620 = vmatprep.subr.mxu0 %v1704_v18  ;;  %v431_v48 = vadd.f32 %v1781_v45, %v1778_v44  ;;  %v430_v51 = vadd.f32 %v1791_v49, %v1784_v46  ;;  %v579_v53 = vld [vmem:[%s2091_s2] sm:$0xff]  ;;  %v449_v54 = vadd.f32 %v433_v47, %v432_v50  ;;  %v580_v55 = vld [vmem:[%s2091_s2 + $0x8] sm:$0xff]  ;;  %v452_v59 = vadd.f32 %v435_v39, %v434_v43 }
  0x48   : > { %621 = vmatpush1.msra.mxu0 %v440_v22  ;;  %v478_v18 = vld [vmem:[%s2095_s6] sm:$0xff]  ;;  %v479_v13 = vld [vmem:[%s2095_s6 + $0x8] sm:$0xff] }
  0x49   : > { %622 = vmatprep.subr.mxu0 %v439_v26  ;;  %v446_v52 = vadd.f32 %v431_v48, %v430_v51 }
  0x4a   : > { %623 = vmatpush1.msra.mxu0 %v438_v27 }
  0x4b   : > { %624 = vmatprep.subr.mxu0 %v437_v31  ;;  %447 = vadd.xlane.f32.xlu1 %v446_v52 }
  0x4c   : > { %625 = vmatpush1.msra.mxu0 %v436_v35  ;;  %v481_v35 = vld [vmem:[%s2095_s6 + $0x18] sm:$0xff] }
  0x4d   : > { %626 = vmatprep.subr.mxu0 %v435_v39  ;;  %v480_v39 = vld [vmem:[%s2095_s6 + $0x10] sm:$0xff] }
  0x4e   : > { %627 = vmatpush1.msra.mxu0 %v434_v43 }
  0x4f   : > { %628 = vmatprep.subr.mxu0 %v433_v47  ;;  %450 = vadd.xlane.f32.xlu1 %v449_v54 }
  0x50   : > { %629 = vmatpush1.msra.mxu0 %v432_v50 }
  0x51   : > { %630 = vmatprep.subr.mxu0 %v431_v48 }
  0x52   : > { %631 = vmatpush1.msra.mxu0 %v430_v51 }
  0x53   : > { %1216 = vmatmul.mubr.msk.f32.vlgmr.msra.gmra.mxu0 %vm593_vm0, %v579_v53  ;;  %456 = vadd.xlane.f32.xlu1 %v455_v56  ;;  %v482_v53 = vld [vmem:[%s2095_s6 + $0x20] sm:$0xff] }
  0x54   : > { %670 = vmatprep.mubr.f32.mxu0 %v1471_v1 }
  0x57   : > { %1217 = vmatmul.mubr.msk.f32.gmra.mxu0 %vm593_vm0, %v580_v55  ;;  %459 = vadd.xlane.f32.xlu1 %v458_v57 }
  0x58   : > { %825 = vmatprep.mubr.f32.mxu0 %v1471_v1 }
  0x5b   : > { %462 = vadd.xlane.f32.xlu1 %v461_v58  ;;  %v483_v58 = vld [vmem:[%s2095_s6 + $0x28] sm:$0xff] }
  0x5f   : > { %465 = vadd.xlane.f32.xlu1 %v464_v60 }
  0x60   : > { %453 = vadd.xlane.f32.xlu0 %v452_v59 }
  0x63   : > { %468 = vadd.xlane.f32.xlu1 %v467_v61 }
  0xb8   : > { %v1810_v2 = vpop.permute.xlu0 %590 }
  0xbc   : > { %v1818_v17 = vpop.permute.xlu0 %585 }
  0xd4   : > { %v448_v62 = vpop.xlane.xlu1 %447 }
  0xd5   : > { %v470_v26 = vmul.f32 0.00390625, %v448_v62 }
  0xd7   : > { %v486_v9 = vmul.f32 %v478_v18, %v470_v26  ;;  %v485_v26 = vld [vmem:[%s2095_s6 + $0x38] sm:$0xff] }
  0xd8   : > { %v451_v63 = vpop.xlane.xlu1 %450 }
  0xd9   : > { %v471_v27 = vmul.f32 0.00390625, %v451_v63  ;;  %v495_v48 = vsel %vm494_vm1, %v486_v9, 0.0 }
  0xdb   : > { %v487_v22 = vmul.f32 %v479_v13, %v471_v27 }
  0xdc   : > { %v457_v0 = vpop.xlane.xlu1 %456 }
  0xdd   : > { %v473_v31 = vmul.f32 0.00390625, %v457_v0  ;;  %v496_v50 = vsel %vm494_vm1, %v487_v22, 0.0 }
  0xde   : > { %v497_v57 = vadd.f32 %v496_v50, %v495_v48 }
  0xdf   : > { %v489_v54 = vmul.f32 %v481_v35, %v473_v31 }
  0xe0   : > { %v460_v8 = vpop.xlane.xlu1 %459 }
  0xe1   : > { %v474_v51 = vmul.f32 0.00390625, %v460_v8  ;;  %v484_v8 = vld [vmem:[%s2095_s6 + $0x30] sm:$0xff]  ;;  %v500_v27 = vsel %vm494_vm1, %v489_v54, 0.0 }
  0xe3   : > { %v490_v60 = vmul.f32 %v482_v53, %v474_v51  ;;  %v527_v53 = vlaneseq }
  0xe4   : > { %v463_v5 = vpop.xlane.xlu1 %462 }
  0xe5   : > { %v475_v56 = vmul.f32 0.00390625, %v463_v5  ;;  %v502_v5 = vsel %vm494_vm1, %v490_v60, 0.0 }
  0xe7   : > { %v491_v18 = vmul.f32 %v483_v58, %v475_v56  ;;  %v528_v56 = vshrl.u32 %v527_v53, 7  ;;  %v516_v58 = vld [vmem:[%s2096_s7] sm:$0x1] }
  0xe8   : > { %v466_v47 = vpop.xlane.xlu1 %465 }
  0xe9   : > { %v454_v43 = vpop.xlane.xlu0 %453  ;;  %v476_v62 = vmul.f32 0.00390625, %v466_v47  ;;  %v504_v35 = vsel %vm494_vm1, %v491_v18, 0.0  ;;  %v529_v60 = vsub.s32 0, %v528_v56  ;;  %v523_v56 = vld [vmem:[%s2097_s8 + $0x20] sm:$0xff] }
  0xea   : > { %v472_v52 = vmul.f32 0.00390625, %v454_v43 }
  0xeb   : > { %v492_v9 = vmul.f32 %v484_v8, %v476_v62 }
  0xec   : > { %v488_v55 = vmul.f32 %v480_v39, %v472_v52  ;;  %v469_v59 = vpop.xlane.xlu1 %468 }
  0xed   : > { %v477_v63 = vmul.f32 0.00390625, %v469_v59  ;;  %v506_v43 = vsel %vm494_vm1, %v492_v9, 0.0 }
  0xee   : > { %v498_v61 = vsel %vm494_vm1, %v488_v55, 0.0 }
  0xef   : > { %v499_v0 = vadd.f32 %v498_v61, %v497_v57  ;;  %v493_v22 = vmul.f32 %v485_v26, %v477_v63  ;;  %v522_v63 = vld [vmem:[%s2097_s8 + $0x18] sm:$0xff]  ;;  %v524_v26 = vld [vmem:[%s2097_s8 + $0x28] sm:$0xff] }
  0xf1   : > { %v501_v13 = vadd.f32 %v500_v27, %v499_v0  ;;  %v508_v47 = vsel %vm494_vm1, %v493_v22, 0.0  ;;  %v519_v0 = vld [vmem:[%s2097_s8] sm:$0xff]  ;;  %v520_v27 = vld [vmem:[%s2097_s8 + $0x8] sm:$0xff] }
  0xf3   : > { %v503_v31 = vadd.f32 %v502_v5, %v501_v13 }
  0xf5   : > { %v505_v39 = vadd.f32 %v504_v35, %v503_v31 }
  0xf7   : > { %v507_v48 = vadd.f32 %v506_v43, %v505_v39  ;;  %v526_v39 = vld [vmem:[%s2097_s8 + $0x38] sm:$0xff]  ;;  %v521_v43 = vld [vmem:[%s2097_s8 + $0x10] sm:$0xff] }
  0xf9   : > { %v509_v50 = vadd.f32 %v508_v47, %v507_v48 }
  0xfb   : > { %v510_v51 = vrot.slane %v509_v50, 4 }
  0xfd   : > { %v511_v52 = vadd.f32 %v510_v51, %v509_v50 }
  0xff   : > { %v512_v54 = vrot.slane %v511_v52, 2 }
 0x101   : > { %v513_v55 = vadd.f32 %v512_v54, %v511_v52 }
 0x103   : > { %v514_v57 = vrot.slane %v513_v55, 1 }
 0x105   : > { %v515_v59 = vadd.f32 %v514_v57, %v513_v55 }
 0x107   : > { %v517_v61 = vadd.f32 %v516_v58, %v515_v59 }
 0x109   : > { %v518_v62 = vmax.f32 %v517_v61, 0.0 }
 0x10b   : > { %v530_v8 = vrot.slane %v518_v62, %v529_v60 }
 0x10d   : > { %v534_v18 = vmul.f32 %v530_v8, %v522_v63  ;;  %v531_v13 = vmul.f32 %v530_v8, %v519_v0  ;;  %v536_v31 = vmul.f32 %v530_v8, %v524_v26  ;;  %v532_v35 = vmul.f32 %v530_v8, %v520_v27  ;;  %v525_v26 = vld [vmem:[%s2097_s8 + $0x30] sm:$0xff] }
 0x10e   : > { %v538_v52 = vmul.f32 %v530_v8, %v526_v39  ;;  %v533_v53 = vmul.f32 %v530_v8, %v521_v43  ;;  %v535_v63 = vmul.f32 %v530_v8, %v523_v56  ;;  %v686_v39 = vld [vmem:[%s2093_s4 + $0x28] sm:$0xff]  ;;  %v693_v43 = vld [vmem:[%s2094_s5 + $0x20] sm:$0xff] }
 0x10f   : > { %v548_v9 = vsel %vm494_vm1, %v534_v18, 0.0  ;;  %v539_v22 = vsel %vm494_vm1, %v531_v13, 0.0  ;;  %v554_v50 = vsel %vm494_vm1, %v536_v31, 0.0  ;;  %v542_v51 = vsel %vm494_vm1, %v532_v35, 0.0  ;;  %v682_v13 = vld [vmem:[%s2093_s4 + $0x8] sm:$0xff]  ;;  %v685_v31 = vld [vmem:[%s2093_s4 + $0x20] sm:$0xff] }
 0x110   : > { %549 = vadd.xlane.f32.xlu0 %v548_v9  ;;  %540 = vadd.xlane.f32.xlu1 %v539_v22  ;;  %v560_v60 = vsel %vm494_vm1, %v538_v52, 0.0  ;;  %v545_v61 = vsel %vm494_vm1, %v533_v53, 0.0  ;;  %v683_v22 = vld [vmem:[%s2093_s4 + $0x10] sm:$0xff]  ;;  %v690_v35 = vld [vmem:[%s2094_s5 + $0x8] sm:$0xff]  ;;  %v688_v52 = vld [vmem:[%s2093_s4 + $0x38] sm:$0xff] }
 0x111   : > { %v692_v53 = vld [vmem:[%s2094_s5 + $0x18] sm:$0xff] }
 0x113   : > { %v666_v5 = vpop.f32.mrf.mxu0 }
 0x114   : > { %555 = vadd.xlane.f32.xlu0 %v554_v50  ;;  %543 = vadd.xlane.f32.xlu1 %v542_v51  ;;  %v667_v59 = vadd.f32 %v666_v5, %v1818_v17  ;;  %v537_v5 = vmul.f32 %v530_v8, %v525_v26  ;;  %v684_v8 = vld [vmem:[%s2093_s4 + $0x18] sm:$0xff]  ;;  %v695_v50 = vld [vmem:[%s2094_s5 + $0x30] sm:$0xff] }
 0x115   : > { %v668_v47 = vpop.f32.mrf.mxu0  ;;  %v691_v51 = vld [vmem:[%s2094_s5 + $0x10] sm:$0xff] }
 0x116   : > { %v669_v57 = vadd.f32 %v668_v47, %v1818_v17  ;;  %v677_v18 = vmax.f32 %v667_v59, 0.0  ;;  %v551_v17 = vsel %vm494_vm1, %v535_v63, 0.0  ;;  %v557_v9 = vsel %vm494_vm1, %v537_v5, 0.0  ;;  %v689_v47 = vld [vmem:[%s2094_s5] sm:$0xff]  ;;  %v564_v59 = vld [vmem:[%s2098_s9 + $0x8] sm:$0xff]  ;;  %v565_v63 = vld [vmem:[%s2098_s9 + $0x10] sm:$0xff] }
 0x117   : > { %v672_v48 = vpop.f32.mrf.mxu0 }
 0x118   : > { %v673_v54 = vadd.f32 %v672_v48, %v1810_v2  ;;  %561 = vadd.xlane.f32.xlu0 %v560_v60  ;;  %546 = vadd.xlane.f32.xlu1 %v545_v61  ;;  %v678_v27 = vmax.f32 %v669_v57, 0.0  ;;  %v687_v48 = vld [vmem:[%s2093_s4 + $0x30] sm:$0xff] }
 0x119   : > { %v674_v55 = vpop.f32.mrf.mxu0 }
 0x11a   : > { %v675_v58 = vadd.f32 %v674_v55, %v1810_v2  ;;  %v679_v0 = vmax.f32 %v673_v54, 0.0  ;;  %v681_v2 = vld [vmem:[%s2093_s4] sm:$0xff]  ;;  %v694_v54 = vld [vmem:[%s2094_s5 + $0x28] sm:$0xff] }
 0x11b   : > { %v563_v55 = vld [vmem:[%s2098_s9] sm:$0xff] }
 0x11c   : > { %v680_v62 = vmax.f32 %v675_v58, 0.0  ;;  %552 = vadd.xlane.f32.xlu1 %v551_v17  ;;  %v567_v17 = vld [vmem:[%s2098_s9 + $0x20] sm:$0xff] }
 0x11e   : > { %789 = vmatprep.subr.mxu0 %v680_v62  ;;  %1250 = vmatprep.subr.mxu1 %v680_v62  ;;  %v566_v62 = vld [vmem:[%s2098_s9 + $0x18] sm:$0xff] }
 0x11f   : > { %790 = vmatpush1.msra.mxu0 %v679_v0  ;;  %1252 = vmatpush1.msra.mxu1 %v679_v0 }
 0x120   : > { %791 = vmatprep.subr.mxu0 %v678_v27  ;;  %1251 = vmatprep.subr.mxu1 %v678_v27 }
 0x121   : > { %792 = vmatpush1.msra.mxu0 %v677_v18  ;;  %1253 = vmatpush1.msra.mxu1 %v677_v18 }
 0x122   : > { %1218 = vmatmul.mubr.msk.f32.vlgmr.msra.gmra.mxu0 %vm494_vm1, %v681_v2  ;;  %1219 = vmatmul.mubr.msk.f32.vlgmr.msra.gmra.mxu1 %vm494_vm1, %v682_v13  ;;  %v568_v2 = vld [vmem:[%s2098_s9 + $0x28] sm:$0xff] }
 0x123   : > { %837 = vmatprep.mubr.f32.mxu1 %v1471_v1  ;;  %558 = vadd.xlane.f32.xlu1 %v557_v9  ;;  %v570_v9 = vld [vmem:[%s2098_s9 + $0x38] sm:$0xff] }
 0x126   : > { %1220 = vmatmul.mubr.msk.f32.gmra.mxu1 %vm494_vm1, %v683_v22 }
 0x127   : > { %843 = vmatprep.mubr.f32.mxu1 %v1471_v1 }
 0x12a   : > { %1221 = vmatmul.mubr.msk.f32.gmra.mxu1 %vm494_vm1, %v684_v8 }
 0x12b   : > { %849 = vmatprep.mubr.f32.mxu1 %v1471_v1 }
 0x12e   : > { %1222 = vmatmul.mubr.msk.f32.gmra.mxu1 %vm494_vm1, %v685_v31  ;;  %704 = vperm.xlu0 %1306, %v690_v35   ;;  %v569_v31 = vld [vmem:[%s2098_s9 + $0x30] sm:$0xff] }
 0x12f   : > { %855 = vmatprep.mubr.f32.mxu1 %v1471_v1 }
 0x132   : > { %1223 = vmatmul.mubr.msk.f32.gmra.mxu1 %vm494_vm1, %v686_v39  ;;  %719 = vperm.xlu0 %1306, %v693_v43  }
 0x133   : > { %861 = vmatprep.mubr.f32.mxu1 %v1471_v1 }
 0x134   : > { %699 = vperm.xlu1 %1307, %v689_v47  }
 0x136   : > { %1224 = vmatmul.mubr.msk.f32.gmra.mxu1 %vm494_vm1, %v687_v48  ;;  %729 = vperm.xlu0 %1306, %v695_v50  }
 0x137   : > { %867 = vmatprep.mubr.f32.mxu1 %v1471_v1  ;;  %v696_v1 = vld [vmem:[%s2094_s5 + $0x38] sm:$0xff] }
 0x138   : > { %709 = vperm.xlu1 %1307, %v691_v51  }
 0x13a   : > { %1225 = vmatmul.mubr.msk.f32.gmra.mxu1 %vm494_vm1, %v688_v52 }
 0x13c   : > { %714 = vperm.xlu1 %1307, %v692_v53  }
 0x140   : > { %724 = vperm.xlu1 %1307, %v694_v54  }
 0x144   : > { %734 = vperm.xlu1 %1307, %v696_v1  }
 0x199   : > { %v541_v56 = vpop.xlane.xlu1 %540  ;;  %v550_v58 = vpop.xlane.xlu0 %549 }
 0x19a   : > { %v571_v57 = vadd.f32 %v563_v55, %v541_v56  ;;  %v574_v27 = vadd.f32 %v566_v62, %v550_v58 }
 0x19c   : > { %876 = vperm.xlu0 %1306, %v571_v57  }
 0x19d   : > { %v544_v60 = vpop.xlane.xlu1 %543  ;;  %v556_v0 = vpop.xlane.xlu0 %555 }
 0x19e   : > { %v572_v61 = vadd.f32 %v564_v59, %v544_v60  ;;  %v576_v13 = vadd.f32 %v568_v2, %v556_v0 }
 0x1a0   : > { %881 = vperm.xlu1 %1307, %v572_v61  }
 0x1a1   : > { %v547_v26 = vpop.xlane.xlu1 %546  ;;  %v562_v22 = vpop.xlane.xlu0 %561 }
 0x1a2   : > { %v573_v18 = vadd.f32 %v565_v63, %v547_v26  ;;  %v578_v35 = vadd.f32 %v570_v9, %v562_v22 }
 0x1a4   : > { %891 = vperm.xlu1 %1307, %v574_v27   ;;  %886 = vperm.xlu0 %1306, %v573_v18  }
 0x1a5   : > { %v553_v5 = vpop.xlane.xlu1 %552 }
 0x1a6   : > { %v575_v8 = vadd.f32 %v567_v17, %v553_v5 }
 0x1a8   : > { %901 = vperm.xlu1 %1307, %v576_v13   ;;  %896 = vperm.xlu0 %1306, %v575_v8  }
 0x1a9   : > { %v705_v55 = vpop.permute.xlu0 %704 }
 0x1ac   : > { %v559_v39 = vpop.xlane.xlu1 %558  ;;  %911 = vperm.xlu1 %1307, %v578_v35  }
 0x1ad   : > { %v577_v43 = vadd.f32 %v569_v31, %v559_v39  ;;  %v720_v58 = vpop.permute.xlu0 %719 }
 0x1af   : > { %906 = vperm.xlu0 %1306, %v577_v43  }
 0x1b0   : > { %v700_v52 = vpop.permute.xlu1 %699 }
 0x1b1   : > { %v730_v63 = vpop.permute.xlu0 %729 }
 0x1b4   : > { %v710_v54 = vpop.permute.xlu1 %709 }
 0x1b8   : > { %v715_v57 = vpop.permute.xlu1 %714 }
 0x1bc   : > { %v725_v61 = vpop.permute.xlu1 %724 }
 0x1c0   : > { %v735_v2 = vpop.permute.xlu1 %734 }
 0x1e2   : > { %v833_v47 = vpop.f32.mrf.mxu1  ;;  %v827_v60 = vpop.f32.mrf.mxu0 }
 0x1e3   : > { %v828_v27 = vadd.f32 %v827_v60, %v700_v52  ;;  %v834_v9 = vadd.f32 %v833_v47, %v705_v55 }
 0x1e4   : > { %v835_v48 = vpop.f32.mrf.mxu1  ;;  %v829_v0 = vpop.f32.mrf.mxu0 }
 0x1e5   : > { %v830_v18 = vadd.f32 %v829_v0, %v700_v52  ;;  %v836_v22 = vadd.f32 %v835_v48, %v705_v55 }
 0x1e6   : > { %v839_v50 = vpop.f32.mrf.mxu1 }
 0x1e7   : > { %v840_v4 = vadd.f32 %v839_v50, %v710_v54 }
 0x1e8   : > { %v841_v51 = vpop.f32.mrf.mxu1 }
 0x1e9   : > { %v842_v7 = vadd.f32 %v841_v51, %v710_v54 }
 0x1ea   : > { %v845_v53 = vpop.f32.mrf.mxu1 }
 0x1eb   : > { %v846_v10 = vadd.f32 %v845_v53, %v715_v57 }
 0x1ec   : > { %v847_v1 = vpop.f32.mrf.mxu1 }
 0x1ed   : > { %v848_v0 = vadd.f32 %v847_v1, %v715_v57 }
 0x1ee   : > { %v851_v56 = vpop.f32.mrf.mxu1 }
 0x1f0   : > { %v853_v59 = vpop.f32.mrf.mxu1 }
 0x1f1   : > { %v854_v51 = vadd.f32 %v853_v59, %v720_v58 }
 0x1f2   : > { %v857_v62 = vpop.f32.mrf.mxu1 }
 0x1f4   : > { %v859_v26 = vpop.f32.mrf.mxu1 }
 0x1f6   : > { %v863_v8 = vpop.f32.mrf.mxu1 }
 0x1f8   : > { %v865_v6 = vpop.f32.mrf.mxu1 }
 0x217   : > { %v877_v17 = vpop.permute.xlu0 %876 }
 0x218   : > { %v914_v13 = vadd.f32 %v877_v17, %v828_v27  ;;  %v915_v5 = vadd.f32 %v877_v17, %v830_v18  ;;  %v858_v18 = vadd.f32 %v857_v62, %v725_v61  ;;  %v869_v17 = vpop.f32.mrf.mxu1 }
 0x21a   : > { %v1226_v31 = vmul.f32 -1.442695, %v914_v13  ;;  %v1227_v35 = vmul.f32 -1.442695, %v915_v5  ;;  %v860_v5 = vadd.f32 %v859_v26, %v725_v61 }
 0x21b   : > { %v882_v39 = vpop.permute.xlu1 %881 }
 0x21c   : > { %1308 = vpow2.f32 %v1226_v31  ;;  %v916_v43 = vadd.f32 %v882_v39, %v834_v9  ;;  %v917_v3 = vadd.f32 %v882_v39, %v836_v22  ;;  %v852_v31 = vadd.f32 %v851_v56, %v720_v58 }
 0x21d   : > { %1310 = vpow2.f32 %v1227_v35  ;;  %v871_v35 = vpop.f32.mrf.mxu1  ;;  %v870_v58 = vadd.f32 %v869_v17, %v735_v2 }
 0x21e   : > { %v1228_v60 = vmul.f32 -1.442695, %v916_v43  ;;  %v1229_v52 = vmul.f32 -1.442695, %v917_v3  ;;  %v872_v59 = vadd.f32 %v871_v35, %v735_v2 }
 0x21f   : > { %v887_v11 = vpop.permute.xlu0 %886  ;;  %v892_v27 = vpop.permute.xlu1 %891 }
 0x220   : > { %1312 = vpow2.f32 %v1228_v60  ;;  %v918_v47 = vadd.f32 %v887_v11, %v840_v4  ;;  %v919_v48 = vadd.f32 %v887_v11, %v842_v7  ;;  %v920_v55 = vadd.f32 %v892_v27, %v846_v10 }
 0x221   : > { %1314 = vpow2.f32 %v1229_v52  ;;  %v921_v13 = vadd.f32 %v892_v27, %v848_v0  ;;  %v864_v10 = vadd.f32 %v863_v8, %v730_v63  ;;  %v866_v11 = vadd.f32 %v865_v6, %v730_v63 }
 0x222   : > { %v1230_v9 = vmul.f32 -1.442695, %v918_v47  ;;  %v1231_v50 = vmul.f32 -1.442695, %v919_v48  ;;  %v1232_v22 = vmul.f32 -1.442695, %v920_v55 }
 0x223   : > { %v1233_v53 = vmul.f32 -1.442695, %v921_v13  ;;  %v902_v54 = vpop.permute.xlu1 %901  ;;  %v897_v3 = vpop.permute.xlu0 %896 }
 0x224   : > { %1316 = vpow2.f32 %v1230_v9  ;;  %v924_v1 = vadd.f32 %v902_v54, %v858_v18  ;;  %v925_v57 = vadd.f32 %v902_v54, %v860_v5  ;;  %v922_v4 = vadd.f32 %v897_v3, %v852_v31 }
 0x225   : > { %1318 = vpow2.f32 %v1231_v50  ;;  %v923_v7 = vadd.f32 %v897_v3, %v854_v51 }
 0x226   : > { %1320 = vpow2.f32 %v1232_v22  ;;  %v1236_v62 = vmul.f32 -1.442695, %v924_v1  ;;  %v1234_v61 = vmul.f32 -1.442695, %v922_v4  ;;  %v1237_v39 = vmul.f32 -1.442695, %v925_v57 }
 0x227   : > { %1322 = vpow2.f32 %v1233_v53  ;;  %v1235_v26 = vmul.f32 -1.442695, %v923_v7  ;;  %v912_v56 = vpop.permute.xlu1 %911  ;;  %v1026_v4 = vsub.f32 %v1784_v46, %v1791_v49 }
 0x228   : > { %1324 = vpow2.f32 %v1236_v62  ;;  %v928_v8 = vadd.f32 %v912_v56, %v870_v58  ;;  %v929_v6 = vadd.f32 %v912_v56, %v872_v59  ;;  %v1028_v59 = vsub.f32 %v1770_v41, %v1773_v42 }
 0x229   : > { %v1309_v60 = vpop.eup %1308  ;;  %1326 = vpow2.f32 %v1234_v61  ;;  %v1030_v41 = vsub.f32 %v1756_v36, %v1759_v37 }
 0x22a   : > { %v907_v43 = vpop.permute.xlu0 %906  ;;  %v1311_v27 = vpop.eup %1310  ;;  %v978_v47 = vadd.f32 1.0, %v1309_v60  ;;  %1328 = vpow2.f32 %v1235_v26  ;;  %v1240_v13 = vmul.f32 -1.442695, %v928_v8  ;;  %v1241_v9 = vmul.f32 -1.442695, %v929_v6 }
 0x22b   : > { %v926_v52 = vadd.f32 %v907_v43, %v864_v10  ;;  %v927_v0 = vadd.f32 %v907_v43, %v866_v11  ;;  %v979_v63 = vadd.f32 1.0, %v1311_v27  ;;  %1330 = vpow2.f32 %v1237_v39 }
 0x22c   : > { %1332 = vrcp.f32 %v978_v47  ;;  %v1027_v11 = vsub.f32 %v1778_v44, %v1781_v45  ;;  %v1029_v60 = vsub.f32 %v1762_v38, %v1767_v40  ;;  %v1031_v38 = vsub.f32 %v1748_v33, %v1751_v34 }
 0x22d   : > { %v1238_v48 = vmul.f32 -1.442695, %v926_v52  ;;  %v1239_v55 = vmul.f32 -1.442695, %v927_v0  ;;  %v1313_v18 = vpop.eup %1312  ;;  %1334 = vrcp.f32 %v979_v63  ;;  %v1033_v33 = vsub.f32 %v1733_v28, %v1736_v29 }
 0x22e   : > { %v1315_v17 = vpop.eup %1314  ;;  %v980_v2 = vadd.f32 1.0, %v1313_v18 }
 0x22f   : > { %1336 = vpow2.f32 %v1238_v48  ;;  %v981_v5 = vadd.f32 1.0, %v1315_v17 }
 0x230   : > { %1338 = vpow2.f32 %v1239_v55 }
 0x231   : > { %1340 = vrcp.f32 %v980_v2  ;;  %v1317_v50 = vpop.eup %1316 }
 0x232   : > { %1342 = vrcp.f32 %v981_v5  ;;  %v1319_v22 = vpop.eup %1318  ;;  %v982_v31 = vadd.f32 1.0, %v1317_v50 }
 0x233   : > { %1344 = vpow2.f32 %v1240_v13  ;;  %v1321_v51 = vpop.eup %1320  ;;  %v983_v53 = vadd.f32 1.0, %v1319_v22  ;;  %v1032_v13 = vsub.f32 %v1739_v30, %v1745_v32  ;;  %v1036_v30 = vsub.f32 %v1707_v19, %v1710_v20 }
 0x234   : > { %1346 = vpow2.f32 %v1241_v9  ;;  %v1323_v54 = vpop.eup %1322  ;;  %v984_v3 = vadd.f32 1.0, %v1321_v51 }
 0x235   : > { %1348 = vrcp.f32 %v982_v31  ;;  %v1325_v1 = vpop.eup %1324  ;;  %v985_v57 = vadd.f32 1.0, %v1323_v54 }
 0x236   : > { %1350 = vrcp.f32 %v983_v53  ;;  %v1327_v35 = vpop.eup %1326  ;;  %v988_v7 = vadd.f32 1.0, %v1325_v1 }
 0x237   : > { %1352 = vrcp.f32 %v984_v3  ;;  %v1329_v10 = vpop.eup %1328  ;;  %v986_v62 = vadd.f32 1.0, %v1327_v35  ;;  %v1037_v35 = vsub.f32 %v1692_v15, %v1695_v16  ;;  %v1038_v15 = vsub.f32 %v1681_v12, %v1689_v14 }
 0x238   : > { %1354 = vrcp.f32 %v985_v57  ;;  %v1331_v61 = vpop.eup %1330  ;;  %v987_v26 = vadd.f32 1.0, %v1329_v10 }
 0x239   : > { %1356 = vrcp.f32 %v988_v7  ;;  %v1333_v39 = vpop.eup %1332  ;;  %v989_v56 = vadd.f32 1.0, %v1331_v61 }
 0x23a   : > { %1358 = vrcp.f32 %v986_v62  ;;  %v1335_v58 = vpop.eup %1334  ;;  %v1042_v43 = vmul.f32 %v1333_v39, %v1026_v4 }
 0x23b   : > { %1360 = vrcp.f32 %v987_v26  ;;  %v1043_v52 = vmul.f32 %v1335_v58, %v1027_v11 }
 0x23c   : > { %v1337_v46 = vpop.eup %1336  ;;  %1362 = vrcp.f32 %v989_v56  ;;  %v1058_v0 = vadd.f32 %v1042_v43, %v1791_v49  ;;  %v2129_v43 = vld [vmem:[#allocation15_spill] sm:$0xff] }
 0x23d   : > { %v1339_v44 = vpop.eup %1338  ;;  %v990_v27 = vadd.f32 1.0, %v1337_v46  ;;  %v1059_v8 = vadd.f32 %v1043_v52, %v1781_v45 }
 0x23e   : > { %v1341_v47 = vpop.eup %1340  ;;  %v991_v6 = vadd.f32 1.0, %v1339_v44  ;;  %v1074_v48 = vmul.f32 2.0, %v1058_v0 }
 0x23f   : > { %v1343_v63 = vpop.eup %1342  ;;  %v1044_v55 = vmul.f32 %v1341_v47, %v1028_v59  ;;  %1364 = vrcp.f32 %v990_v27  ;;  %v1075_v17 = vmul.f32 2.0, %v1059_v8  ;;  %v2128_v59 = vld [vmem:[#allocation16_spill] sm:$0xff]  ;;  %v2130_v47 = vld [vmem:[#allocation14_spill] sm:$0xff]  ;;  %v2131_v8 = vld [vmem:[#allocation13_spill] sm:$0xff] }
 0x240   : > { %v1345_v18 = vpop.eup %1344  ;;  %v1045_v2 = vmul.f32 %v1343_v63, %v1029_v60  ;;  %1366 = vrcp.f32 %v991_v6  ;;  %1090 = vst [vmem:[%s1989_s28] sm:$0xff] %v1074_v48  ;;  %v1040_v6 = vsub.f32 %v2131_v8, %v2130_v47  ;;  %v2133_v48 = vld [vmem:[#allocation11_spill] sm:$0xff] }
 0x241   : > { %v1347_v49 = vpop.eup %1346  ;;  %v1060_v36 = vadd.f32 %v1044_v55, %v1773_v42  ;;  %v992_v45 = vadd.f32 1.0, %v1345_v18  ;;  %1091 = vst [vmem:[%s1989_s28 + $0x8] sm:$0xff] %v1075_v17  ;;  %v1034_v42 = vsub.f32 %v1722_v24, %v1725_v25 }
 0x242   : > { %v1349_v5 = vpop.eup %1348  ;;  %v1061_v9 = vadd.f32 %v1045_v2, %v1767_v40  ;;  %v993_v50 = vadd.f32 1.0, %v1347_v49  ;;  %v1035_v40 = vsub.f32 %v1713_v21, %v1719_v23 }
 0x243   : > { %v1351_v22 = vpop.eup %1350  ;;  %v1076_v31 = vmul.f32 2.0, %v1060_v36  ;;  %v1046_v51 = vmul.f32 %v1349_v5, %v1030_v41  ;;  %1368 = vrcp.f32 %v992_v45  ;;  %v2132_v41 = vld [vmem:[#allocation12_spill] sm:$0xff] }
 0x244   : > { %v1353_v53 = vpop.eup %1352  ;;  %v1077_v54 = vmul.f32 2.0, %v1061_v9  ;;  %v1047_v3 = vmul.f32 %v1351_v22, %v1031_v38  ;;  %1370 = vrcp.f32 %v993_v50  ;;  %v1041_v55 = vsub.f32 %v2133_v48, %v2132_v41 }
 0x245   : > { %v1355_v28 = vpop.eup %1354  ;;  %1092 = vst [vmem:[%s1989_s28 + $0x10] sm:$0xff] %v1076_v31  ;;  %v1062_v1 = vadd.f32 %v1046_v51, %v1759_v37  ;;  %v1048_v57 = vmul.f32 %v1353_v53, %v1032_v13 }
 0x246   : > { %v1357_v19 = vpop.eup %1356  ;;  %1093 = vst [vmem:[%s1989_s28 + $0x18] sm:$0xff] %v1077_v54  ;;  %v1063_v4 = vadd.f32 %v1047_v3, %v1751_v34  ;;  %v1049_v24 = vmul.f32 %v1355_v28, %v1033_v33 }
 0x247   : > { %v1359_v7 = vpop.eup %1358  ;;  %v1078_v10 = vmul.f32 2.0, %v1062_v1  ;;  %v1064_v11 = vadd.f32 %v1048_v57, %v1745_v32  ;;  %v1052_v62 = vmul.f32 %v1357_v19, %v1036_v30  ;;  %v1039_v32 = vsub.f32 %v2129_v43, %v2128_v59 }
 0x248   : > { %v1361_v21 = vpop.eup %1360  ;;  %v1079_v61 = vmul.f32 2.0, %v1063_v4  ;;  %v1065_v37 = vadd.f32 %v1049_v24, %v1736_v29  ;;  %v1050_v26 = vmul.f32 %v1359_v7, %v1034_v42 }
 0x249   : > { %v1363_v39 = vpop.eup %1362  ;;  %1094 = vst [vmem:[%s1989_s28 + $0x20] sm:$0xff] %v1078_v10  ;;  %v1080_v34 = vmul.f32 2.0, %v1064_v11  ;;  %v1051_v56 = vmul.f32 %v1361_v21, %v1035_v40  ;;  %v1068_v58 = vadd.f32 %v1052_v62, %v1710_v20 }
 0x24a   : > { %1095 = vst [vmem:[%s1989_s28 + $0x28] sm:$0xff] %v1079_v61  ;;  %v1081_v46 = vmul.f32 2.0, %v1065_v37  ;;  %v1066_v29 = vadd.f32 %v1050_v26, %v1725_v25  ;;  %v1053_v60 = vmul.f32 %v1363_v39, %v1037_v35 }
 0x24b   : > { %1096 = vst [vmem:[%s1989_s28 + $0x30] sm:$0xff] %v1080_v34  ;;  %v1067_v52 = vadd.f32 %v1051_v56, %v1719_v23  ;;  %v1084_v12 = vmul.f32 2.0, %v1068_v58 }
 0x24c   : > { %v1365_v44 = vpop.eup %1364  ;;  %1097 = vst [vmem:[%s1989_s28 + $0x38] sm:$0xff] %v1081_v46  ;;  %v1082_v0 = vmul.f32 2.0, %v1066_v29  ;;  %v1069_v20 = vadd.f32 %v1053_v60, %v1695_v16 }
 0x24d   : > { %v1367_v27 = vpop.eup %1366  ;;  %v1083_v63 = vmul.f32 2.0, %v1067_v52  ;;  %1100 = vst [vmem:[%s1989_s28 + $0x50] sm:$0xff] %v1084_v12  ;;  %v1054_v25 = vmul.f32 %v1365_v44, %v1038_v15 }
 0x24e   : > { %1098 = vst [vmem:[%s1989_s28 + $0x40] sm:$0xff] %v1082_v0  ;;  %v1085_v23 = vmul.f32 2.0, %v1069_v20  ;;  %v1055_v18 = vmul.f32 %v1367_v27, %v1039_v32 }
 0x24f   : > { %1099 = vst [vmem:[%s1989_s28 + $0x48] sm:$0xff] %v1083_v63  ;;  %v1070_v16 = vadd.f32 %v1054_v25, %v1689_v14  ;;  %v1372_v14 = vld [vmem:[%s1633_s11 + $0x78] sm:$0xff]  ;;  %s1472_s11 = smov [#allocation5]  }
 0x250   : > { %v1369_v38 = vpop.eup %1368  ;;  %1101 = vst [vmem:[%s1989_s28 + $0x58] sm:$0xff] %v1085_v23  ;;  %v1071_v17 = vadd.f32 %v1055_v18, %v2128_v59  ;;  %s1405_s20 = sshll.u32 %s1472_s11, 4  ;;  %s1406_s20 = int_to_ptr.vmem [resolvable:$false] %s1405_s20 }
 0x251   : > { %v1371_v2 = vpop.eup %1370  ;;  %v1086_v49 = vmul.f32 2.0, %v1070_v16  ;;  %v1056_v13 = vmul.f32 %v1369_v38, %v1040_v6  ;;  %s1407_s21 = scalar_lea.vmem %s1406_s20, 4096  ;;  %p1408_p7 = scmp.lt.s32.totalorder %s2044_s15, %s1406_s20 }
 0x252   : > { %v1087_v36 = vmul.f32 2.0, %v1071_v17  ;;  %v1057_v45 = vmul.f32 %v1371_v2, %v1041_v55  ;;  %p1409_p8 = scmp.lt.s32.totalorder %s1407_s21, %s1401_s12 }
 0x253   : > { %1102 = vst [vmem:[%s1989_s28 + $0x60] sm:$0xff] %v1086_v49  ;;  %v1072_v5 = vadd.f32 %v1056_v13, %v2130_v47 }
 0x254   : > { %1103 = vst [vmem:[%s1989_s28 + $0x68] sm:$0xff] %v1087_v36  ;;  %v1073_v33 = vadd.f32 %v1372_v14, %v1057_v45  ;;  %p1410_p10 = por %p1409_p8, %p1408_p7 }
 0x255   : > { %v1088_v9 = vmul.f32 2.0, %v1072_v5 }
 0x256   : > { %v1089_v50 = vmul.f32 2.0, %v1073_v33  ;;  %p1411_p0 = pnand %p1410_p10, %p1404_p5 }
 0x257   : > { %1104 = vst [vmem:[%s1989_s28 + $0x70] sm:$0xff] %v1088_v9 }
 0x258   : > { %1105 = vst [vmem:[%s1989_s28 + $0x78] sm:$0xff] %v1089_v50 }
 0x259   : > { %1414 = shalt.err (!%p1411_p0)
}
 0x25a   : > { %s1415_s24 = scalar_lea.hbm %s2042_s22, 2048  ;;  %s1419_s28 = scalar_lea.hbm %s2099_s10, 4096 }
 0x25b   : > { %p1416_p2 = scmp.ne.s32.totalorder %s2042_s22, %s1415_s24  ;;  %p1420_p3 = scmp.lt.s32.totalorder %s2042_s22, %s2099_s10 }
 0x25c   : > { %p1421_p6 = scmp.lt.s32.totalorder %s1419_s28, %s1415_s24 }
 0x25d   : > { %p1417_p9 = pnand %p1416_p2, %p2134_p13 }
 0x25e   : > { %p1422_p11 = por %p1421_p6, %p1420_p3 }
 0x25f   : > { %p1418_p1 = pneg %p1417_p9 }
 0x261   : > { %p1423_p12 = pnand %p1422_p11, %p1418_p1 }
 0x263   : > { %1426 = shalt.err (!%p1423_p12)
}
 0x264   : > { %s1473_s23 = smov 256   ;;  %s1474_s12 = smov 16  }
 0x265   : > { %1256 = dma.vmem_to_hbm [thread:$0]  (%p2134_p13), %s2044_s15, 2048, %s2042_s22, %s1107_s17, %s1473_s23, %s1473_s23, %s1474_s12  }
 0x266 PF: > { %s1135_s11 = sand.u32 1, %s1453_s13   ;;  %p2135_p4 = scmp.ne.s32.totalorder %s2119_s26, 0 }
 0x267   : > { %p2136_p5 = scmp.ge.s32.totalorder %s1465_s16, 2  ;;  %s1136_s20 = scalar_lea.sflag [#allocation4], %s1135_s11 }
 0x269   : > { %p1263_p7 = pnand %p2136_p5, %p2135_p4 }
 0x26b   : > { %p1264_p8 = pneg %p1263_p7 }
 0x26d   : > { %1448 = dma.done.wait (%p1264_p8), %s1136_s20, 2048  }
 0x26e   : > { %1450 = vsyncadd (%p1264_p8), %s1136_s20, 4294965248  ;;  %s2137_s16 = sld [smem:[#allocation9_spill]]  ;;  %s2140_s13 = smov %s1457_s14 }
 0x26f   : > { %s2138_s21 = sld [smem:[#allocation8_spill]] }
 0x270   : > { %s2139_s15 = sld [smem:[#allocation10_spill]] }
 0x274   : > { %p23_p10 = scmp.ge.s32.totalorder %s2137_s16, 4  }
 0x275   : > { %s2141_s14 = smov %s2138_s21 }
 0x276   :  { %25 = sbr.rel (!%p23_p10) target bundleno = 5 (0x5), region = 108 }
 0x27b   :  { %1141 = vsyncpa [#allocation3], 1 }
 0x27c   :  { %1143 = vsyncpa [#allocation3 + $0x1], 1 }
 0x27d   :  { %1144 = vsyncpa [#allocation4], 1 }
 0x27e   :  { %1146 = vsyncpa [#allocation4 + $0x1], 1 }

</bundles_post_ra>
